<compile_context>
chip_gen: v7x
topology: tpu7x:2x2x1
jax: 0.10.0
libtpu: 0.0.40
codegen_flags: <defaults>
</compile_context>

<pallas_src>
import jax
import jax.numpy as jnp
from jax.experimental import pallas as pl
from jax.experimental.pallas import tpu as pltpu


def _conv3x3_relu_kernel(x_ref, w_ref, b_ref, o_ref, acc_ref):
    # x_ref:   (1, 1, TH+2, W, 3*Cin)  kw-expanded, halo'd row tile
    # w_ref:   (3, 3*Cin, Cout_pad)    per-kh fused weights (lane-padded Cout)
    # b_ref:   (1, Cout_pad)           bias (f32, lane-padded)
    # o_ref:   (1, TH, W, Cout_pad)    lane-dense output tile
    # acc_ref: VMEM (TH*W, Cout_pad)   f32 accumulator scratch
    _, TH, W, Cp = o_ref.shape
    K = w_ref.shape[1]

    def tap(kh):
        # H-slice only: contiguous (W, 3*Cin) slabs -> layout-preserving reshape.
        return x_ref[0, 0, kh:kh + TH, :, :].reshape(TH * W, K)

    # Three fused-K matmuls (K = 3*Cin), accumulated in f32 scratch.
    acc_ref[...] = jnp.dot(tap(0), w_ref[0], preferred_element_type=jnp.float32)
    acc_ref[...] += jnp.dot(tap(1), w_ref[1], preferred_element_type=jnp.float32)
    acc_ref[...] += jnp.dot(tap(2), w_ref[2], preferred_element_type=jnp.float32)

    y = jnp.maximum(acc_ref[...] + b_ref[...], 0.0)          # bias + ReLU (f32)
    o_ref[...] = y.reshape(1, TH, W, Cp).astype(o_ref.dtype)


def _pick_row_tile(h, cap=128):
    if h <= cap:
        return h
    for th in range(cap, 0, -1):
        if h % th == 0:
            return th
    return h


def conv_relu(x_nchw, w_oihw, bias, *, compute_dtype=None):
    """ConvRelu forward: (N, Cin, H, W) -> (N, Cout, H, W), PyTorch semantics."""
    N, Cin, H, W = x_nchw.shape
    Cout = w_oihw.shape[0]
    out_dtype = x_nchw.dtype
    if compute_dtype is None:
        compute_dtype = x_nchw.dtype

    Cout_pad = ((Cout + 127) // 128) * 128       # lane-dense output channels
    K = 3 * Cin
    TH = _pick_row_tile(H)
    R = H // TH

    # ---- glue / layout plumbing (wrapper side) ----
    # NCHW -> NHWC, zero-pad H/W by 1 (padding=1).
    x_nhwc = jnp.transpose(x_nchw, (0, 2, 3, 1))
    x_pad = jnp.pad(x_nhwc, ((0, 0), (1, 1), (1, 1), (0, 0)))
    # kw-expansion: x_kw[n, h, w, kw*Cin + c] = x_pad[n, h, w + kw, c].
    # TODO(synk): for large Cin replace the 3x input expansion by the halo-wide
    # matmul + pltpu.roll scheme to keep HBM input traffic at 1x.
    x_kw = jnp.concatenate(
        [x_pad[:, :, kw:kw + W, :] for kw in range(3)], axis=-1)
    # Row tiles with a 2-row halo so every BlockSpec stays plain Blocked.
    x_tiles = jnp.stack(
        [x_kw[:, r * TH:r * TH + TH + 2] for r in range(R)], axis=1)
    x_tiles = x_tiles.astype(compute_dtype)      # (N, R, TH+2, W, 3*Cin)

    # Weights OIHW -> (3, 3*Cin, Cout_pad); row index = kw*Cin + c.
    w_hwio = jnp.transpose(w_oihw, (2, 3, 1, 0))            # (3, 3, Cin, Cout)
    w_k = w_hwio.reshape(3, K, Cout)
    w_k = jnp.pad(w_k, ((0, 0), (0, 0), (0, Cout_pad - Cout))).astype(compute_dtype)
    b_p = jnp.pad(bias.astype(jnp.float32),
                  (0, Cout_pad - Cout)).reshape(1, Cout_pad)

    out_nhwc = pl.pallas_call(
        _conv3x3_relu_kernel,
        out_shape=jax.ShapeDtypeStruct((N, H, W, Cout_pad), out_dtype),
        grid_spec=pltpu.PrefetchScalarGridSpec(
            num_scalar_prefetch=0,
            grid=(N, R),
            in_specs=[
                pl.BlockSpec((1, 1, TH + 2, W, K), lambda n, r: (n, r, 0, 0, 0)),
                pl.BlockSpec((3, K, Cout_pad), lambda n, r: (0, 0, 0)),
                pl.BlockSpec((1, Cout_pad), lambda n, r: (0, 0)),
            ],
            out_specs=pl.BlockSpec((1, TH, W, Cout_pad),
                                   lambda n, r: (n, r, 0, 0)),
            scratch_shapes=[pltpu.VMEM((TH * W, Cout_pad), jnp.float32)],
        ),
        compiler_params=pltpu.CompilerParams(
            dimension_semantics=("parallel", "parallel"),
            vmem_limit_bytes=48 * 1024 * 1024,
        ),
    )(x_tiles, w_k, b_p)

    # Drop channel padding, back to NCHW to match PyTorch.
    return jnp.transpose(out_nhwc[..., :Cout], (0, 3, 1, 2))


if __name__ == "__main__":
    key = jax.random.PRNGKey(0)
    N, Cin, H, W = 2, 4, 16, 16
    Cout = 8

    k_x, k_w, k_b = jax.random.split(key, 3)
    x = jax.random.normal(k_x, (N, Cin, H, W), dtype=jnp.float32)

    # Deterministic init mimicking nn.Conv2d default (uniform(-bound, bound)).
    fan_in = Cin * 3 * 3
    bound = 1.0 / float(fan_in) ** 0.5
    w_oihw = jax.random.uniform(k_w, (Cout, Cin, 3, 3),
                                minval=-bound, maxval=bound, dtype=jnp.float32)
    bias = jax.random.uniform(k_b, (Cout,), minval=-bound, maxval=bound,
                              dtype=jnp.float32)

    # Reference: XLA conv + bias + ReLU, same NCHW semantics as nn.Conv2d.
    ref = jax.lax.conv_general_dilated(
        x, w_oihw, window_strides=(1, 1), padding="SAME",
        dimension_numbers=("NCHW", "OIHW", "NCHW"))
    ref = jnp.maximum(ref + bias[None, :, None, None], 0.0)

    # f32 operand path (tight check).
    out = jax.block_until_ready(conv_relu(x, w_oihw, bias))
    assert out.shape == (N, Cout, H, W)
    assert jnp.allclose(out, ref, atol=1e-4, rtol=1e-4)

    # bf16 operands / f32 accumulation (v6e/v7x MXU path), loosened tolerance.
    out_bf16 = jax.block_until_ready(
        conv_relu(x, w_oihw, bias, compute_dtype=jnp.bfloat16))
    assert jnp.allclose(out_bf16, ref, atol=1e-1)

    print("KERNEL_OK")
</pallas_src>

<mosaic_0001>
module attributes {stable_mosaic.version = 11 : i64} {
  func.func @_conv3x3_relu_kernel(%arg0: i32, %arg1: i32, %arg2: memref<1x1x18x16x12xf32, #tpu.memory_space<vmem>>, %arg3: memref<3x12x128xf32, #tpu.memory_space<vmem>>, %arg4: memref<1x128xf32, #tpu.memory_space<vmem>>, %arg5: memref<1x16x16x128xf32, #tpu.memory_space<vmem>>, %arg6: memref<256x128xf32, #tpu.memory_space<vmem>>) attributes {dimension_semantics = [#tpu.dimension_semantics<parallel>, #tpu.dimension_semantics<parallel>], iteration_bounds = array<i64: 2, 1>, scalar_prefetch = 0 : i64, scratch_operands = 1 : i64, tpu.core_type = #tpu.core_type<tc>, window_params = [{transform_indices = @transform_0, window_bounds = array<i64: 1, 1, 18, 16, 12>}, {pipeline_mode = #tpu.pipeline_mode<synchronous>, transform_indices = @transform_1, window_bounds = array<i64: 3, 12, 128>}, {pipeline_mode = #tpu.pipeline_mode<synchronous>, transform_indices = @transform_2, window_bounds = array<i64: 1, 128>}, {transform_indices = @transform_3, window_bounds = array<i64: 1, 16, 16, 128>}]} {
    %c0 = arith.constant 0 : index
    %c0_0 = arith.constant 0 : index
    %c0_1 = arith.constant 0 : index
    %c0_2 = arith.constant 0 : index
    %c0_3 = arith.constant 0 : index
    %0 = vector.load %arg2[%c0, %c0_0, %c0_1, %c0_2, %c0_3] : memref<1x1x18x16x12xf32, #tpu.memory_space<vmem>>, vector<1x1x16x16x12xf32>
    %1 = vector.shape_cast %0 : vector<1x1x16x16x12xf32> to vector<16x16x12xf32>
    %2 = vector.shape_cast %1 : vector<16x16x12xf32> to vector<256x12xf32>
    %c0_4 = arith.constant 0 : index
    %c0_5 = arith.constant 0 : index
    %c0_6 = arith.constant 0 : index
    %3 = vector.load %arg3[%c0_4, %c0_5, %c0_6] : memref<3x12x128xf32, #tpu.memory_space<vmem>>, vector<1x12x128xf32>
    %4 = vector.shape_cast %3 : vector<1x12x128xf32> to vector<12x128xf32>
    %cst = arith.constant dense<0.000000e+00> : vector<256x128xf32>
    %5 = tpu.matmul %2, %4, %cst {dimension_numbers = #tpu.dot_dimension_numbers<[1], [0], [0], [1], [0, 0, 1, 1], [], []>} : vector<256x12xf32>, vector<12x128xf32>, vector<256x128xf32> -> vector<256x128xf32>
    %c0_7 = arith.constant 0 : index
    %c0_8 = arith.constant 0 : index
    %6 = vector.load %arg6[%c0_7, %c0_8] : memref<256x128xf32, #tpu.memory_space<vmem>>, vector<256x128xf32>
    tpu.vector_store %arg6[%c0_7, %c0_8], %5 {strides = array<i32>} : memref<256x128xf32, #tpu.memory_space<vmem>>, vector<256x128xf32>,
    %c0_9 = arith.constant 0 : index
    %c0_10 = arith.constant 0 : index
    %7 = vector.load %arg6[%c0_9, %c0_10] : memref<256x128xf32, #tpu.memory_space<vmem>>, vector<256x128xf32>
    %c0_11 = arith.constant 0 : index
    %c0_12 = arith.constant 0 : index
    %c1 = arith.constant 1 : index
    %c0_13 = arith.constant 0 : index
    %c0_14 = arith.constant 0 : index
    %8 = vector.load %arg2[%c0_11, %c0_12, %c1, %c0_13, %c0_14] : memref<1x1x18x16x12xf32, #tpu.memory_space<vmem>>, vector<1x1x16x16x12xf32>
    %9 = vector.shape_cast %8 : vector<1x1x16x16x12xf32> to vector<16x16x12xf32>
    %10 = vector.shape_cast %9 : vector<16x16x12xf32> to vector<256x12xf32>
    %c1_15 = arith.constant 1 : index
    %c0_16 = arith.constant 0 : index
    %c0_17 = arith.constant 0 : index
    %11 = vector.load %arg3[%c1_15, %c0_16, %c0_17] : memref<3x12x128xf32, #tpu.memory_space<vmem>>, vector<1x12x128xf32>
    %12 = vector.shape_cast %11 : vector<1x12x128xf32> to vector<12x128xf32>
    %cst_18 = arith.constant dense<0.000000e+00> : vector<256x128xf32>
    %13 = tpu.matmul %10, %12, %cst_18 {dimension_numbers = #tpu.dot_dimension_numbers<[1], [0], [0], [1], [0, 0, 1, 1], [], []>} : vector<256x12xf32>, vector<12x128xf32>, vector<256x128xf32> -> vector<256x128xf32>
    %14 = arith.addf %7, %13 : vector<256x128xf32>
    %c0_19 = arith.constant 0 : index
    %c0_20 = arith.constant 0 : index
    %15 = vector.load %arg6[%c0_19, %c0_20] : memref<256x128xf32, #tpu.memory_space<vmem>>, vector<256x128xf32>
    tpu.vector_store %arg6[%c0_19, %c0_20], %14 {strides = array<i32>} : memref<256x128xf32, #tpu.memory_space<vmem>>, vector<256x128xf32>,
    %c0_21 = arith.constant 0 : index
    %c0_22 = arith.constant 0 : index
    %16 = vector.load %arg6[%c0_21, %c0_22] : memref<256x128xf32, #tpu.memory_space<vmem>>, vector<256x128xf32>
    %c0_23 = arith.constant 0 : index
    %c0_24 = arith.constant 0 : index
    %c2 = arith.constant 2 : index
    %c0_25 = arith.constant 0 : index
    %c0_26 = arith.constant 0 : index
    %17 = vector.load %arg2[%c0_23, %c0_24, %c2, %c0_25, %c0_26] : memref<1x1x18x16x12xf32, #tpu.memory_space<vmem>>, vector<1x1x16x16x12xf32>
    %18 = vector.shape_cast %17 : vector<1x1x16x16x12xf32> to vector<16x16x12xf32>
    %19 = vector.shape_cast %18 : vector<16x16x12xf32> to vector<256x12xf32>
    %c2_27 = arith.constant 2 : index
    %c0_28 = arith.constant 0 : index
    %c0_29 = arith.constant 0 : index
    %20 = vector.load %arg3[%c2_27, %c0_28, %c0_29] : memref<3x12x128xf32, #tpu.memory_space<vmem>>, vector<1x12x128xf32>
    %21 = vector.shape_cast %20 : vector<1x12x128xf32> to vector<12x128xf32>
    %cst_30 = arith.constant dense<0.000000e+00> : vector<256x128xf32>
    %22 = tpu.matmul %19, %21, %cst_30 {dimension_numbers = #tpu.dot_dimension_numbers<[1], [0], [0], [1], [0, 0, 1, 1], [], []>} : vector<256x12xf32>, vector<12x128xf32>, vector<256x128xf32> -> vector<256x128xf32>
    %23 = arith.addf %16, %22 : vector<256x128xf32>
    %c0_31 = arith.constant 0 : index
    %c0_32 = arith.constant 0 : index
    %24 = vector.load %arg6[%c0_31, %c0_32] : memref<256x128xf32, #tpu.memory_space<vmem>>, vector<256x128xf32>
    tpu.vector_store %arg6[%c0_31, %c0_32], %23 {strides = array<i32>} : memref<256x128xf32, #tpu.memory_space<vmem>>, vector<256x128xf32>,
    %c0_33 = arith.constant 0 : index
    %c0_34 = arith.constant 0 : index
    %25 = vector.load %arg6[%c0_33, %c0_34] : memref<256x128xf32, #tpu.memory_space<vmem>>, vector<256x128xf32>
    %c0_35 = arith.constant 0 : index
    %c0_36 = arith.constant 0 : index
    %26 = vector.load %arg4[%c0_35, %c0_36] : memref<1x128xf32, #tpu.memory_space<vmem>>, vector<1x128xf32>
    %27 = vector.broadcast %26 : vector<1x128xf32> to vector<256x128xf32>
    %28 = arith.addf %25, %27 : vector<256x128xf32>
    %cst_37 = arith.constant 0.000000e+00 : f32
    %29 = vector.broadcast %cst_37 : f32 to vector<256x128xf32>
    %30 = arith.maximumf %28, %29 : vector<256x128xf32>
    %31 = vector.shape_cast %30 : vector<256x128xf32> to vector<1x16x16x128xf32>
    %c0_38 = arith.constant 0 : index
    %c0_39 = arith.constant 0 : index
    %c0_40 = arith.constant 0 : index
    %c0_41 = arith.constant 0 : index
    %32 = vector.load %arg5[%c0_38, %c0_39, %c0_40, %c0_41] : memref<1x16x16x128xf32, #tpu.memory_space<vmem>>, vector<1x16x16x128xf32>
    tpu.vector_store %arg5[%c0_38, %c0_39, %c0_40, %c0_41], %31 {strides = array<i32>} : memref<1x16x16x128xf32, #tpu.memory_space<vmem>>, vector<1x16x16x128xf32>,
    return
  }
  func.func @transform_0(%arg0: i32, %arg1: i32) -> (i32, i32, i32, i32, i32) {
    %c0_i32 = arith.constant 0 : i32
    %c0_i32_0 = arith.constant 0 : i32
    %c0_i32_1 = arith.constant 0 : i32
    %c0_i32_2 = arith.constant 0 : i32
    return %arg0, %arg1, %c0_i32, %c0_i32_0, %c0_i32_1 : i32, i32, i32, i32, i32
  }
  func.func @transform_1(%arg0: i32, %arg1: i32) -> (i32, i32, i32) {
    %c0_i32 = arith.constant 0 : i32
    %c0_i32_0 = arith.constant 0 : i32
    %c0_i32_1 = arith.constant 0 : i32
    %c0_i32_2 = arith.constant 0 : i32
    return %c0_i32, %c0_i32_0, %c0_i32_1 : i32, i32, i32
  }
  func.func @transform_2(%arg0: i32, %arg1: i32) -> (i32, i32) {
    %c0_i32 = arith.constant 0 : i32
    %c0_i32_0 = arith.constant 0 : i32
    %c0_i32_1 = arith.constant 0 : i32
    return %c0_i32, %c0_i32_0 : i32, i32
  }
  func.func @transform_3(%arg0: i32, %arg1: i32) -> (i32, i32, i32, i32) {
    %c0_i32 = arith.constant 0 : i32
    %c0_i32_0 = arith.constant 0 : i32
    %c0_i32_1 = arith.constant 0 : i32
    return %arg0, %arg1, %c0_i32, %c0_i32_0 : i32, i32, i32, i32
  }
}

</mosaic_0001>

<bundles_post_ra>
// kernel: tpu_custom_call.1
= control target key start
LH: loop header
LB: loop body
LE: loop exit
PB: predicated region body
PF: predicated region fallthrough
CT: control target
= control target key end

     0   :  { %8 = vsyncpa [#allocation4], 0  ;;  %s2797_s0 = inlined_call_operand.vmem [shape: f32[2,1,18,16,12], index: 0, kind: input, shape index: {}]   ;;  %s2798_s1 = inlined_call_operand.vmem [shape: f32[3,12,128], index: 1, kind: input, shape index: {}]   ;;  %s2799_s2 = inlined_call_operand.vmem [shape: f32[1,128], index: 2, kind: input, shape index: {}]   ;;  %s2800_s3 = inlined_call_operand.hbm [shape: f32[2,16,16,128], index: 3, kind: output, shape index: {}]  }
   0x1   :  { %10 = vsyncpa [#allocation4 + $0x1], 0  ;;  %s2422_s12 = smov 0   ;;  %s2424_s13 = smov 0  }
   0x2   :  { %s2426_s14 = smov 0   ;;  %s2428_s15 = smov 0  }
   0x3   :  { %s2430_s16 = smov 0   ;;  %s2432_s17 = smov 0  }
   0x4 LB: > { %s1736_s18 = sadd.s32 4294967295, %s2396_s17   ;;  %s1737_s19 = sadd.s32 4294967294, %s2396_s17   ;;  %s2396_s17 = sphi %s2432_s17, %s16_s17   ;;  %s2392_s16 = sphi %s2430_s16, %s2809_s16   ;;  %s2388_s15 = sphi %s2428_s15, %s2808_s15   ;;  %s2384_s14 = sphi %s2426_s14, %s2807_s14   ;;  %s2380_s13 = sphi %s2424_s13, %s2806_s13   ;;  %s2376_s12 = sphi %s2422_s12, %s2805_s12  }
   0x5   : > { %s28_s20 = sadd.s32 1, %s2392_s16  ;;  %s107_s21 = sadd.s32 1, %s2384_s14 }
   0x6   : > { %p30_p0 = scmp.ge.s32.totalorder %s28_s20, 2  ;;  %p117_p1 = scmp.ne.s32.totalorder %s2384_s14, %s2380_s13 }
   0x7   : > { %p118_p2 = scmp.eq.s32.totalorder %s1736_s18, 1  ;;  %p123_p3 = scmp.ne.s32.totalorder %s2380_s13, %s2376_s12 }
   0x8   : > { %s2811_s20 = smov (%p30_p0, %s28_s20), 0  ;;  %p124_p5 = scmp.eq.s32.totalorder %s1737_s19, 1 }
   0x9   : > { %p2462_p4 = por %p118_p2, %p117_p1  ;;  %s102_s23 = ssub.s32 %s2392_s16, %s2811_s20 }
   0xa   : > { %p1740_p6 = scmp.ge.s32.totalorder %s2396_s17, 1  ;;  %p105_p7 = scmp.eq.s32.totalorder %s102_s23, 0 }
   0xb   : > { %p2469_p8 = por %p124_p5, %p123_p3  ;;  %p160_p9 = scmp.lt.s32.totalorder %s2396_s17, 3 }
   0xc   : > { %s2475_s25 = scalar_select %p105_p7, %s2384_s14, %s107_s21  }
   0xd   : > { %p161_p10 = pnand %p1740_p6, %p160_p9 }
   0xe   : > { %v230_v0 = vld [vmem:[%s2798_s1] sm:$0xff] (!%p161_p10)  ;;  %v231_v1 = vld [vmem:[%s2798_s1 + $0x8] sm:$0xf] (!%p161_p10)  ;;  %vm329_vm0 = vcmask (!%p161_p10), 1043456   ;;  %v1808_v2 = vld [vmem:[%s2798_s1 + $0x10] sm:$0xff] (!%p161_p10)  ;;  %vm2398_vm1 = vmmov (!%p161_p10), 1  }
   0xf   : > { %164 = sbr.rel (%p161_p10) target bundleno = 355 (0x163), region = 32  ;;  %v2175_v3 = vpack.c.bf16 (!%p161_p10), %v231_v1, %v230_v0  ;;  %vm2486_vm2 = vmpackc.low (!%p161_p10), %vm329_vm0, %vm2398_vm1  ;;  %v1809_v5 = vld [vmem:[%s2798_s1 + $0x18] sm:$0xf] (!%p161_p10)  ;;  %p188_p11 = scmp.lt.s32.totalorder (!%p161_p10), %s2388_s15, 1  ;;  %v1875_v6 = vld [vmem:[%s2798_s1 + $0x20] sm:$0xff] (!%p161_p10)  ;;  %vm232_vm3 = vcmask (!%p161_p10), 97280  }
  0x10   : > { %v2181_v7 = vpack.c.bf16 (!%p161_p10), %v1809_v5, %v1808_v2  ;;  %v1876_v8 = vld [vmem:[%s2798_s1 + $0x28] sm:$0xf] (!%p161_p10)  ;;  %s185_s26 = sand.u32 (!%p161_p10), 1, %s2380_s13   ;;  %v2666_v63 = vld [vmem:[%s2799_s2] ss:$0 sm:$0xff] (!%p161_p10)  ;;  %s1916_s4 = sshll.u32 (!%p161_p10), %s2388_s15, 12 }
  0x11   : > { %2177 = vmatprep.subr.msk.bf16.mxu1 (!%p161_p10), %vm2486_vm2, %v2175_v3  ;;  %v2187_v9 = vpack.c.bf16 (!%p161_p10), %v1876_v8, %v1875_v6  ;;  %s1741_s29 = sshll.u32 (!%p161_p10), %s185_s26, 8  ;;  %s2743_s8 = scalar_lea.hbm (!%p161_p10), %s2800_s3, %s1916_s4 }
  0x12   : > { %2183 = vmatprep.subr.msk.bf16.mxu0 (!%p161_p10), %vm2486_vm2, %v2181_v7  ;;  %2180 = vmatpush3.bf16.msk.msra.mxu1 (!%p161_p10), %vm2486_vm2, %v2175_v3  ;;  %s2672_s30 = scalar_lea.vmem (!%p161_p10), [#allocation3], %s1741_s29  ;;  %s2399_s10 = smov (!%p161_p10), [#allocation3]  }
  0x13   : > { %2186 = vmatpush3.bf16.msk.msra.mxu0 (!%p161_p10), %vm2486_vm2, %v2181_v7  ;;  %2193 = vmatprep.subr.msk.bf16.mxu1 (!%p161_p10), %vm2486_vm2, %v2181_v7  ;;  %s1654_s5 = sshll.u32 (!%p161_p10), %s2672_s30, 4  ;;  %s2745_s5 = int_to_ptr.vmem [resolvable:$true] %s1654_s5 }
  0x14   : > { %2189 = vmatprep.subr.msk.bf16.mxu0 (!%p161_p10), %vm2486_vm2, %v2187_v9  ;;  %s2318_s9 = scalar_lea.vmem (!%p161_p10), %s2745_s5, 4096 }
  0x15   : > { %p2319_p12 = scmp.ne.s32.totalorder (!%p161_p10), %s2745_s5, %s2318_s9 }
  0x16   : > { %s189_s11 = scalar_select %p188_p11, %s2388_s15, 1 }
  0x17   : > { %s2751_s15 = scalar_lea.sflag [#allocation4], %s185_s26  ;;  %p2320_p13 = pnand %p2319_p12, %p2462_p4 }
  0x18   : > { %s2259_s18 = smul.u32 288, %s189_s11  ;;  %s2322_s11 = sshll.u32 %s2399_s10, 4  ;;  %s2323_s11 = int_to_ptr.vmem [resolvable:$false] %s2322_s11 }
  0x19   : > { %p2321_p0 = pneg %p2320_p13  ;;  %p2325_p1 = scmp.lt.s32.totalorder %s2745_s5, %s2323_s11 }
  0x1a   : > { %s2516_s23 = scalar_lea.vmem %s2797_s0, %s2259_s18  ;;  %s2324_s18 = scalar_lea.vmem %s2323_s11, 8192 }
  0x1b   : > { %v198_v10 = vld [vmem:[%s2516_s23] sm:$0xff]  ;;  %v1776_v11 = vld [vmem:[%s2516_s23 + $0x10] sm:$0xff]  ;;  %v199_v12 = vld [vmem:[%s2516_s23 + $0x8] sm:$0xff]  ;;  %p2326_p2 = scmp.lt.s32.totalorder %s2324_s18, %s2318_s9 }
  0x1c   : > { %2023 = vmatprep.mubr.msk.f32.mxu1 %vm232_vm3, %v198_v10  ;;  %2075 = vmatprep.mubr.msk.f32.mxu0 %vm232_vm3, %v1776_v11  ;;  %v1777_v13 = vld [vmem:[%s2516_s23 + $0x18] sm:$0xff]  ;;  %v1778_v14 = vld [vmem:[%s2516_s23 + $0x20] sm:$0xff]  ;;  %v1779_v15 = vld [vmem:[%s2516_s23 + $0x28] sm:$0xff] }
  0x1d   : > { %2024 = vmatmul.mubr.msk.f32.vlgmr.msra.gmra.mrb[0].mxu1 %vm232_vm3, %v199_v12  ;;  %2076 = vmatmul.mubr.msk.f32.vlgmr.msra.gmra.mrb[0].mxu0 %vm232_vm3, %v1777_v13  ;;  %v1780_v16 = vld [vmem:[%s2516_s23 + $0x30] sm:$0xff]  ;;  %v1781_v17 = vld [vmem:[%s2516_s23 + $0x38] sm:$0xff]  ;;  %v1782_v18 = vld [vmem:[%s2516_s23 + $0x40] sm:$0xff]  ;;  %p2327_p3 = por %p2326_p2, %p2325_p1 }
  0x1e   : > { %2194 = vmatpush3.bf16.msk.msra.mxu1 %vm2486_vm2, %v2181_v7  ;;  %2192 = vmatpush3.bf16.msk.msra.mxu0 %vm2486_vm2, %v2187_v9  ;;  %v1783_v19 = vld [vmem:[%s2516_s23 + $0x48] sm:$0xff]  ;;  %v1784_v20 = vld [vmem:[%s2516_s23 + $0x50] sm:$0xff]  ;;  %v1785_v21 = vld [vmem:[%s2516_s23 + $0x58] sm:$0xff] }
  0x1f   : > { %2026 = vmatprep.mubr.msk.f32.mxu1 %vm232_vm3, %v1776_v11  ;;  %2078 = vmatprep.mubr.msk.f32.mxu0 %vm232_vm3, %v1778_v14  ;;  %v1786_v22 = vld [vmem:[%s2516_s23 + $0x60] sm:$0xff]  ;;  %v1787_v23 = vld [vmem:[%s2516_s23 + $0x68] sm:$0xff]  ;;  %v1788_v24 = vld [vmem:[%s2516_s23 + $0x70] sm:$0xff]  ;;  %p2328_p5 = pnand %p2327_p3, %p2321_p0 }
  0x20   : > { %v1789_v25 = vld [vmem:[%s2516_s23 + $0x78] sm:$0xff]  ;;  %v1790_v26 = vld [vmem:[%s2516_s23 + $0x80] sm:$0xff]  ;;  %v1791_v27 = vld [vmem:[%s2516_s23 + $0x88] sm:$0xff] }
  0x21   : > { %2027 = vmatmul.mubr.msk.f32.gmra.mrb[2].mxu1 %vm232_vm3, %v1777_v13  ;;  %2079 = vmatmul.mubr.msk.f32.gmra.mrb[2].mxu0 %vm232_vm3, %v1779_v15  ;;  %v216_v28 = vld [vmem:[%s2516_s23 + $0x90] sm:$0xff]  ;;  %v217_v29 = vld [vmem:[%s2516_s23 + $0x98] sm:$0xff]  ;;  %v218_v30 = vld [vmem:[%s2516_s23 + $0xa0] sm:$0xff] }
  0x22   : > { %2029 = vmatprep.mubr.msk.f32.mxu1 %vm232_vm3, %v1778_v14  ;;  %2081 = vmatprep.mubr.msk.f32.mxu0 %vm232_vm3, %v1780_v16  ;;  %v219_v31 = vld [vmem:[%s2516_s23 + $0xa8] sm:$0xff]  ;;  %v220_v32 = vld [vmem:[%s2516_s23 + $0xb0] sm:$0xff]  ;;  %v221_v33 = vld [vmem:[%s2516_s23 + $0xb8] sm:$0xff] }
  0x23   : > { %v222_v34 = vld [vmem:[%s2516_s23 + $0xc0] sm:$0xff]  ;;  %v223_v35 = vld [vmem:[%s2516_s23 + $0xc8] sm:$0xff]  ;;  %v224_v36 = vld [vmem:[%s2516_s23 + $0xd0] sm:$0xff] }
  0x24   : > { %v225_v37 = vld [vmem:[%s2516_s23 + $0xd8] sm:$0xff]  ;;  %v226_v38 = vld [vmem:[%s2516_s23 + $0xe0] sm:$0xff]  ;;  %v227_v39 = vld [vmem:[%s2516_s23 + $0xe8] sm:$0xff] }
  0x25   : > { %2030 = vmatmul.mubr.msk.f32.gmra.mrb[4].mxu1 %vm232_vm3, %v1779_v15  ;;  %2082 = vmatmul.mubr.msk.f32.gmra.mrb[4].mxu0 %vm232_vm3, %v1781_v17  ;;  %v228_v40 = vld [vmem:[%s2516_s23 + $0xf0] sm:$0xff]  ;;  %v229_v41 = vld [vmem:[%s2516_s23 + $0xf8] sm:$0xff]  ;;  %v1871_v42 = vld [vmem:[%s2516_s23 + $0x100] sm:$0xff] }
  0x26   : > { %2032 = vmatprep.mubr.msk.f32.mxu1 %vm232_vm3, %v1780_v16  ;;  %2084 = vmatprep.mubr.msk.f32.mxu0 %vm232_vm3, %v1782_v18  ;;  %v1872_v43 = vld [vmem:[%s2516_s23 + $0x108] sm:$0xff]  ;;  %v1873_v44 = vld [vmem:[%s2516_s23 + $0x110] sm:$0xff]  ;;  %v1874_v45 = vld [vmem:[%s2516_s23 + $0x118] sm:$0xff] }
  0x29   : > { %2033 = vmatmul.mubr.msk.f32.gmra.mrb[6].mxu1 %vm232_vm3, %v1781_v17  ;;  %2085 = vmatmul.mubr.msk.f32.gmra.mrb[6].mxu0 %vm232_vm3, %v1783_v19 }
  0x2a   : > { %2035 = vmatprep.mubr.msk.f32.mxu1 %vm232_vm3, %v1782_v18  ;;  %2087 = vmatprep.mubr.msk.f32.mxu0 %vm232_vm3, %v1784_v20 }
  0x2d   : > { %2036 = vmatmul.mubr.msk.f32.gmra.mrb[8].mxu1 %vm232_vm3, %v1783_v19  ;;  %2088 = vmatmul.mubr.msk.f32.gmra.mrb[8].mxu0 %vm232_vm3, %v1785_v21 }
  0x2e   : > { %2038 = vmatprep.mubr.msk.f32.mxu1 %vm232_vm3, %v1784_v20  ;;  %2090 = vmatprep.mubr.msk.f32.mxu0 %vm232_vm3, %v1786_v22 }
  0x31   : > { %2039 = vmatmul.mubr.msk.f32.gmra.mrb[10].mxu1 %vm232_vm3, %v1785_v21  ;;  %2091 = vmatmul.mubr.msk.f32.gmra.mrb[10].mxu0 %vm232_vm3, %v1787_v23 }
  0x32   : > { %2041 = vmatprep.mubr.msk.f32.mxu1 %vm232_vm3, %v1786_v22  ;;  %2093 = vmatprep.mubr.msk.f32.mxu0 %vm232_vm3, %v1788_v24 }
  0x35   : > { %2042 = vmatmul.mubr.msk.f32.gmra.mrb[12].mxu1 %vm232_vm3, %v1787_v23  ;;  %2094 = vmatmul.mubr.msk.f32.gmra.mrb[12].mxu0 %vm232_vm3, %v1789_v25 }
  0x36   : > { %2044 = vmatprep.mubr.msk.f32.mxu1 %vm232_vm3, %v1788_v24  ;;  %2096 = vmatprep.mubr.msk.f32.mxu0 %vm232_vm3, %v1790_v26 }
  0x39   : > { %2045 = vmatmul.mubr.msk.f32.gmra.mrb[14].mxu1 %vm232_vm3, %v1789_v25  ;;  %2097 = vmatmul.mubr.msk.f32.gmra.mrb[14].mxu0 %vm232_vm3, %v1791_v27 }
  0x3a   : > { %2047 = vmatprep.mubr.msk.f32.mxu1 %vm232_vm3, %v1790_v26  ;;  %2127 = vmatprep.mubr.msk.f32.mxu0 %vm232_vm3, %v1778_v14 }
  0x3d   : > { %2048 = vmatmul.mubr.msk.f32.gmra.mrb[16].mxu1 %vm232_vm3, %v1791_v27  ;;  %2128 = vmatmul.mubr.msk.f32.vlgmr.msra.gmra.mrb[0].mxu0 %vm232_vm3, %v1779_v15 }
  0x3e   : > { %2050 = vmatprep.mubr.msk.f32.mxu1 %vm232_vm3, %v216_v28  ;;  %2130 = vmatprep.mubr.msk.f32.mxu0 %vm232_vm3, %v1780_v16 }
  0x41   : > { %2051 = vmatmul.mubr.msk.f32.gmra.mrb[18].mxu1 %vm232_vm3, %v217_v29  ;;  %2131 = vmatmul.mubr.msk.f32.gmra.mrb[2].mxu0 %vm232_vm3, %v1781_v17 }
  0x42   : > { %2053 = vmatprep.mubr.msk.f32.mxu1 %vm232_vm3, %v218_v30  ;;  %2133 = vmatprep.mubr.msk.f32.mxu0 %vm232_vm3, %v1782_v18 }
  0x45   : > { %2054 = vmatmul.mubr.msk.f32.gmra.mrb[20].mxu1 %vm232_vm3, %v219_v31  ;;  %2134 = vmatmul.mubr.msk.f32.gmra.mrb[4].mxu0 %vm232_vm3, %v1783_v19 }
  0x46   : > { %2056 = vmatprep.mubr.msk.f32.mxu1 %vm232_vm3, %v220_v32  ;;  %2136 = vmatprep.mubr.msk.f32.mxu0 %vm232_vm3, %v1784_v20 }
  0x49   : > { %2057 = vmatmul.mubr.msk.f32.gmra.mrb[22].mxu1 %vm232_vm3, %v221_v33  ;;  %2137 = vmatmul.mubr.msk.f32.gmra.mrb[6].mxu0 %vm232_vm3, %v1785_v21 }
  0x4a   : > { %2059 = vmatprep.mubr.msk.f32.mxu1 %vm232_vm3, %v222_v34  ;;  %2139 = vmatprep.mubr.msk.f32.mxu0 %vm232_vm3, %v1786_v22 }
  0x4d   : > { %2060 = vmatmul.mubr.msk.f32.gmra.mrb[24].mxu1 %vm232_vm3, %v223_v35  ;;  %2140 = vmatmul.mubr.msk.f32.gmra.mrb[8].mxu0 %vm232_vm3, %v1787_v23 }
  0x4e   : > { %2062 = vmatprep.mubr.msk.f32.mxu1 %vm232_vm3, %v224_v36  ;;  %2142 = vmatprep.mubr.msk.f32.mxu0 %vm232_vm3, %v1788_v24 }
  0x51   : > { %2063 = vmatmul.mubr.msk.f32.gmra.mrb[26].mxu1 %vm232_vm3, %v225_v37  ;;  %2143 = vmatmul.mubr.msk.f32.gmra.mrb[10].mxu0 %vm232_vm3, %v1789_v25 }
  0x52   : > { %2065 = vmatprep.mubr.msk.f32.mxu1 %vm232_vm3, %v226_v38  ;;  %2145 = vmatprep.mubr.msk.f32.mxu0 %vm232_vm3, %v1790_v26 }
  0x55   : > { %2066 = vmatmul.mubr.msk.f32.gmra.mrb[28].mxu1 %vm232_vm3, %v227_v39  ;;  %2146 = vmatmul.mubr.msk.f32.gmra.mrb[12].mxu0 %vm232_vm3, %v1791_v27 }
  0x56   : > { %2068 = vmatprep.mubr.msk.f32.mxu1 %vm232_vm3, %v228_v40  ;;  %2148 = vmatprep.mubr.msk.f32.mxu0 %vm232_vm3, %v216_v28 }
  0x59   : > { %2069 = vmatmul.mubr.msk.f32.gmra.mrb[30].mxu1 %vm232_vm3, %v229_v41  ;;  %2149 = vmatmul.mubr.msk.f32.gmra.mrb[14].mxu0 %vm232_vm3, %v217_v29 }
  0x5a   : > { %2099 = vmatprep.mubr.msk.f32.mxu1 %vm232_vm3, %v216_v28  ;;  %2151 = vmatprep.mubr.msk.f32.mxu0 %vm232_vm3, %v218_v30 }
  0x5d   : > { %2100 = vmatmul.mubr.msk.f32.vlgmr.msra.gmra.mrb[16].mxu1 %vm232_vm3, %v217_v29  ;;  %2152 = vmatmul.mubr.msk.f32.gmra.mrb[16].mxu0 %vm232_vm3, %v219_v31 }
  0x5e   : > { %2102 = vmatprep.mubr.msk.f32.mxu1 %vm232_vm3, %v218_v30  ;;  %2154 = vmatprep.mubr.msk.f32.mxu0 %vm232_vm3, %v220_v32 }
  0x61   : > { %2103 = vmatmul.mubr.msk.f32.gmra.mrb[18].mxu1 %vm232_vm3, %v219_v31  ;;  %2155 = vmatmul.mubr.msk.f32.gmra.mrb[18].mxu0 %vm232_vm3, %v221_v33 }
  0x62   : > { %2105 = vmatprep.mubr.msk.f32.mxu1 %vm232_vm3, %v220_v32  ;;  %2157 = vmatprep.mubr.msk.f32.mxu0 %vm232_vm3, %v222_v34 }
  0x65   : > { %2106 = vmatmul.mubr.msk.f32.gmra.mrb[20].mxu1 %vm232_vm3, %v221_v33  ;;  %2158 = vmatmul.mubr.msk.f32.gmra.mrb[20].mxu0 %vm232_vm3, %v223_v35 }
  0x66   : > { %2108 = vmatprep.mubr.msk.f32.mxu1 %vm232_vm3, %v222_v34  ;;  %2160 = vmatprep.mubr.msk.f32.mxu0 %vm232_vm3, %v224_v36 }
  0x69   : > { %2109 = vmatmul.mubr.msk.f32.gmra.mrb[22].mxu1 %vm232_vm3, %v223_v35  ;;  %2161 = vmatmul.mubr.msk.f32.gmra.mrb[22].mxu0 %vm232_vm3, %v225_v37 }
  0x6a   : > { %2111 = vmatprep.mubr.msk.f32.mxu1 %vm232_vm3, %v224_v36  ;;  %2163 = vmatprep.mubr.msk.f32.mxu0 %vm232_vm3, %v226_v38 }
  0x6d   : > { %2112 = vmatmul.mubr.msk.f32.gmra.mrb[24].mxu1 %vm232_vm3, %v225_v37  ;;  %2164 = vmatmul.mubr.msk.f32.gmra.mrb[24].mxu0 %vm232_vm3, %v227_v39 }
  0x6e   : > { %2114 = vmatprep.mubr.msk.f32.mxu1 %vm232_vm3, %v226_v38  ;;  %2166 = vmatprep.mubr.msk.f32.mxu0 %vm232_vm3, %v228_v40 }
  0x71   : > { %2115 = vmatmul.mubr.msk.f32.gmra.mrb[26].mxu1 %vm232_vm3, %v227_v39  ;;  %2167 = vmatmul.mubr.msk.f32.gmra.mrb[26].mxu0 %vm232_vm3, %v229_v41 }
  0x72   : > { %2117 = vmatprep.mubr.msk.f32.mxu1 %vm232_vm3, %v228_v40  ;;  %2169 = vmatprep.mubr.msk.f32.mxu0 %vm232_vm3, %v1871_v42 }
  0x75   : > { %2118 = vmatmul.mubr.msk.f32.gmra.mrb[28].mxu1 %vm232_vm3, %v229_v41  ;;  %2170 = vmatmul.mubr.msk.f32.gmra.mrb[28].mxu0 %vm232_vm3, %v1872_v43 }
  0x76   : > { %2120 = vmatprep.mubr.msk.f32.mxu1 %vm232_vm3, %v1871_v42  ;;  %2172 = vmatprep.mubr.msk.f32.mxu0 %vm232_vm3, %v1873_v44 }
  0x79   : > { %2121 = vmatmul.mubr.msk.f32.gmra.mrb[30].mxu1 %vm232_vm3, %v1872_v43  ;;  %2173 = vmatmul.mubr.msk.f32.gmra.mrb[30].mxu0 %vm232_vm3, %v1874_v45 }
  0xf0   : > { %v2025_v46 = vpop.f32.mrb[0].mxu1 }
  0xf1   : > { %v399_v47 = vpop.f32.mrb[1].mxu1 }
  0xf4   : > { %v2028_v48 = vpop.f32.mrb[2].mxu1 }
  0xf5   : > { %v409_v49 = vpop.f32.mrb[3].mxu1 }
  0xf8   : > { %v2031_v50 = vpop.f32.mrb[4].mxu1 }
  0xf9   : > { %v419_v51 = vpop.f32.mrb[5].mxu1 }
  0xfc   : > { %v2034_v52 = vpop.f32.mrb[6].mxu1 }
  0xfd   : > { %v429_v53 = vpop.f32.mrb[7].mxu1 }
 0x100   : > { %v2037_v54 = vpop.f32.mrb[8].mxu1 }
 0x101   : > { %v439_v55 = vpop.f32.mrb[9].mxu1 }
 0x104   : > { %v2040_v56 = vpop.f32.mrb[10].mxu1 }
 0x105   : > { %v449_v57 = vpop.f32.mrb[11].mxu1 }
 0x108   : > { %v2654_v58 = vpop.f32.mrb[12].mxu1 }
 0x109   : > { %v2656_v59 = vpop.f32.mrb[13].mxu1 }
 0x10c   : > { %v2658_v60 = vpop.f32.mrb[14].mxu1 }
 0x10d   : > { %v2660_v61 = vpop.f32.mrb[15].mxu1 }
 0x110   : > { %v2129_v62 = vpop.f32.mrb[0].mxu0 }
 0x111   : > { %v2195_v0 = vadd.f32 %v2129_v62, %v2025_v46  ;;  %v1279_v1 = vpop.f32.mrb[1].mxu0 }
 0x112   : > { %v2196_v2 = vadd.f32 %v1279_v1, %v399_v47 }
 0x113   : > { %v1542_v3 = vadd.f32 %v2195_v0, %v2666_v63 }
 0x114   : > { %v1541_v4 = vadd.f32 %v2196_v2, %v2666_v63  ;;  %v2132_v5 = vpop.f32.mrb[2].mxu0 }
 0x115   : > { %v1574_v6 = vmax.f32 %v1542_v3, 0.0  ;;  %v2197_v7 = vadd.f32 %v2132_v5, %v2028_v48  ;;  %v1289_v8 = vpop.f32.mrb[3].mxu0 }
 0x116   : > { %v1573_v9 = vmax.f32 %v1541_v4, 0.0  ;;  %v2198_v10 = vadd.f32 %v1289_v8, %v409_v49 }
 0x117   : > { %1606 = vst [vmem:[%s2672_s30 + $0x8] sm:$0xff] %v1574_v6  ;;  %v1544_v11 = vadd.f32 %v2197_v7, %v2666_v63 }
 0x118   : > { %1605 = vst [vmem:[%s2672_s30] sm:$0xff] %v1573_v9  ;;  %v1543_v12 = vadd.f32 %v2198_v10, %v2666_v63  ;;  %v2135_v13 = vpop.f32.mrb[4].mxu0 }
 0x119   : > { %v1576_v14 = vmax.f32 %v1544_v11, 0.0  ;;  %v2199_v15 = vadd.f32 %v2135_v13, %v2031_v50  ;;  %v1299_v16 = vpop.f32.mrb[5].mxu0 }
 0x11a   : > { %v1575_v17 = vmax.f32 %v1543_v12, 0.0  ;;  %v2200_v18 = vadd.f32 %v1299_v16, %v419_v51 }
 0x11b   : > { %1608 = vst [vmem:[%s2672_s30 + $0x18] sm:$0xff] %v1576_v14  ;;  %v1546_v19 = vadd.f32 %v2199_v15, %v2666_v63 }
 0x11c   : > { %1607 = vst [vmem:[%s2672_s30 + $0x10] sm:$0xff] %v1575_v17  ;;  %v1545_v20 = vadd.f32 %v2200_v18, %v2666_v63  ;;  %v2138_v21 = vpop.f32.mrb[6].mxu0 }
 0x11d   : > { %v1578_v22 = vmax.f32 %v1546_v19, 0.0  ;;  %v2201_v23 = vadd.f32 %v2138_v21, %v2034_v52  ;;  %v1309_v24 = vpop.f32.mrb[7].mxu0 }
 0x11e   : > { %v1577_v25 = vmax.f32 %v1545_v20, 0.0  ;;  %v2202_v26 = vadd.f32 %v1309_v24, %v429_v53 }
 0x11f   : > { %1610 = vst [vmem:[%s2672_s30 + $0x28] sm:$0xff] %v1578_v22  ;;  %v1548_v27 = vadd.f32 %v2201_v23, %v2666_v63 }
 0x120   : > { %1609 = vst [vmem:[%s2672_s30 + $0x20] sm:$0xff] %v1577_v25  ;;  %v1547_v28 = vadd.f32 %v2202_v26, %v2666_v63  ;;  %v2141_v29 = vpop.f32.mrb[8].mxu0 }
 0x121   : > { %v1580_v30 = vmax.f32 %v1548_v27, 0.0  ;;  %v2203_v31 = vadd.f32 %v2141_v29, %v2037_v54  ;;  %v1319_v32 = vpop.f32.mrb[9].mxu0 }
 0x122   : > { %v1579_v33 = vmax.f32 %v1547_v28, 0.0  ;;  %v2204_v34 = vadd.f32 %v1319_v32, %v439_v55 }
 0x123   : > { %1612 = vst [vmem:[%s2672_s30 + $0x38] sm:$0xff] %v1580_v30  ;;  %v1550_v35 = vadd.f32 %v2203_v31, %v2666_v63 }
 0x124   : > { %1611 = vst [vmem:[%s2672_s30 + $0x30] sm:$0xff] %v1579_v33  ;;  %v1549_v36 = vadd.f32 %v2204_v34, %v2666_v63  ;;  %v2144_v37 = vpop.f32.mrb[10].mxu0 }
 0x125   : > { %v1582_v38 = vmax.f32 %v1550_v35, 0.0  ;;  %v2205_v39 = vadd.f32 %v2144_v37, %v2040_v56  ;;  %v1329_v40 = vpop.f32.mrb[11].mxu0 }
 0x126   : > { %v1581_v41 = vmax.f32 %v1549_v36, 0.0  ;;  %v2206_v42 = vadd.f32 %v1329_v40, %v449_v57 }
 0x127   : > { %1614 = vst [vmem:[%s2672_s30 + $0x48] sm:$0xff] %v1582_v38  ;;  %v1552_v43 = vadd.f32 %v2205_v39, %v2666_v63 }
 0x128   : > { %1613 = vst [vmem:[%s2672_s30 + $0x40] sm:$0xff] %v1581_v41  ;;  %v1551_v44 = vadd.f32 %v2206_v42, %v2666_v63  ;;  %v2147_v45 = vpop.f32.mrb[12].mxu0 }
 0x129   : > { %v1584_v46 = vmax.f32 %v1552_v43, 0.0  ;;  %v2207_v47 = vadd.f32 %v2147_v45, %v2654_v58  ;;  %v1339_v48 = vpop.f32.mrb[13].mxu0 }
 0x12a   : > { %v1583_v49 = vmax.f32 %v1551_v44, 0.0  ;;  %v2208_v50 = vadd.f32 %v1339_v48, %v2656_v59 }
 0x12b   : > { %1616 = vst [vmem:[%s2672_s30 + $0x58] sm:$0xff] %v1584_v46  ;;  %v1554_v51 = vadd.f32 %v2207_v47, %v2666_v63 }
 0x12c   : > { %1615 = vst [vmem:[%s2672_s30 + $0x50] sm:$0xff] %v1583_v49  ;;  %v1553_v52 = vadd.f32 %v2208_v50, %v2666_v63  ;;  %v2150_v53 = vpop.f32.mrb[14].mxu0 }
 0x12d   : > { %v1586_v54 = vmax.f32 %v1554_v51, 0.0  ;;  %v2209_v55 = vadd.f32 %v2150_v53, %v2658_v60  ;;  %v1349_v56 = vpop.f32.mrb[15].mxu0 }
 0x12e   : > { %v1585_v57 = vmax.f32 %v1553_v52, 0.0  ;;  %v2210_v58 = vadd.f32 %v1349_v56, %v2660_v61 }
 0x12f   : > { %1618 = vst [vmem:[%s2672_s30 + $0x68] sm:$0xff] %v1586_v54  ;;  %v1556_v62 = vadd.f32 %v2209_v55, %v2666_v63 }
 0x130   : > { %1617 = vst [vmem:[%s2672_s30 + $0x60] sm:$0xff] %v1585_v57  ;;  %v1555_v59 = vadd.f32 %v2210_v58, %v2666_v63  ;;  %v2101_v0 = vpop.f32.mrb[16].mxu1  ;;  %v2153_v1 = vpop.f32.mrb[16].mxu0 }
 0x131   : > { %v1588_v2 = vmax.f32 %v1556_v62, 0.0  ;;  %v2211_v3 = vadd.f32 %v2153_v1, %v2101_v0  ;;  %v903_v4 = vpop.f32.mrb[17].mxu1  ;;  %v1359_v5 = vpop.f32.mrb[17].mxu0 }
 0x132   : > { %v1587_v60 = vmax.f32 %v1555_v59, 0.0  ;;  %v2212_v6 = vadd.f32 %v1359_v5, %v903_v4 }
 0x133   : > { %1620 = vst [vmem:[%s2672_s30 + $0x78] sm:$0xff] %v1588_v2  ;;  %v1558_v7 = vadd.f32 %v2211_v3, %v2666_v63 }
 0x134   : > { %1619 = vst [vmem:[%s2672_s30 + $0x70] sm:$0xff] %v1587_v60  ;;  %v1557_v61 = vadd.f32 %v2212_v6, %v2666_v63  ;;  %v2104_v8 = vpop.f32.mrb[18].mxu1  ;;  %v2156_v9 = vpop.f32.mrb[18].mxu0 }
 0x135   : > { %v1590_v10 = vmax.f32 %v1558_v7, 0.0  ;;  %v2213_v11 = vadd.f32 %v2156_v9, %v2104_v8  ;;  %v913_v12 = vpop.f32.mrb[19].mxu1  ;;  %v1369_v13 = vpop.f32.mrb[19].mxu0 }
 0x136   : > { %v1589_v14 = vmax.f32 %v1557_v61, 0.0  ;;  %v2214_v15 = vadd.f32 %v1369_v13, %v913_v12 }
 0x137   : > { %1622 = vst [vmem:[%s2672_s30 + $0x88] sm:$0xff] %v1590_v10  ;;  %v1560_v16 = vadd.f32 %v2213_v11, %v2666_v63 }
 0x138   : > { %1621 = vst [vmem:[%s2672_s30 + $0x80] sm:$0xff] %v1589_v14  ;;  %v1559_v17 = vadd.f32 %v2214_v15, %v2666_v63  ;;  %v2107_v18 = vpop.f32.mrb[20].mxu1  ;;  %v2159_v19 = vpop.f32.mrb[20].mxu0 }
 0x139   : > { %v1592_v20 = vmax.f32 %v1560_v16, 0.0  ;;  %v2215_v21 = vadd.f32 %v2159_v19, %v2107_v18  ;;  %v923_v22 = vpop.f32.mrb[21].mxu1  ;;  %v1379_v23 = vpop.f32.mrb[21].mxu0 }
 0x13a   : > { %v1591_v24 = vmax.f32 %v1559_v17, 0.0  ;;  %v2216_v25 = vadd.f32 %v1379_v23, %v923_v22 }
 0x13b   : > { %1624 = vst [vmem:[%s2672_s30 + $0x98] sm:$0xff] %v1592_v20  ;;  %v1562_v26 = vadd.f32 %v2215_v21, %v2666_v63 }
 0x13c   : > { %1623 = vst [vmem:[%s2672_s30 + $0x90] sm:$0xff] %v1591_v24  ;;  %v1561_v27 = vadd.f32 %v2216_v25, %v2666_v63  ;;  %v2110_v28 = vpop.f32.mrb[22].mxu1  ;;  %v2162_v29 = vpop.f32.mrb[22].mxu0 }
 0x13d   : > { %v1594_v30 = vmax.f32 %v1562_v26, 0.0  ;;  %v2217_v31 = vadd.f32 %v2162_v29, %v2110_v28  ;;  %v933_v32 = vpop.f32.mrb[23].mxu1  ;;  %v1389_v33 = vpop.f32.mrb[23].mxu0 }
 0x13e   : > { %v1593_v34 = vmax.f32 %v1561_v27, 0.0  ;;  %v2218_v35 = vadd.f32 %v1389_v33, %v933_v32 }
 0x13f   : > { %1626 = vst [vmem:[%s2672_s30 + $0xa8] sm:$0xff] %v1594_v30  ;;  %v1564_v36 = vadd.f32 %v2217_v31, %v2666_v63 }
 0x140   : > { %1625 = vst [vmem:[%s2672_s30 + $0xa0] sm:$0xff] %v1593_v34  ;;  %v1563_v37 = vadd.f32 %v2218_v35, %v2666_v63  ;;  %v2113_v38 = vpop.f32.mrb[24].mxu1  ;;  %v2165_v39 = vpop.f32.mrb[24].mxu0 }
 0x141   : > { %v1596_v40 = vmax.f32 %v1564_v36, 0.0  ;;  %v2219_v41 = vadd.f32 %v2165_v39, %v2113_v38  ;;  %v943_v42 = vpop.f32.mrb[25].mxu1  ;;  %v1399_v43 = vpop.f32.mrb[25].mxu0 }
 0x142   : > { %v1595_v44 = vmax.f32 %v1563_v37, 0.0  ;;  %v2220_v45 = vadd.f32 %v1399_v43, %v943_v42 }
 0x143   : > { %1628 = vst [vmem:[%s2672_s30 + $0xb8] sm:$0xff] %v1596_v40  ;;  %v1566_v46 = vadd.f32 %v2219_v41, %v2666_v63 }
 0x144   : > { %1627 = vst [vmem:[%s2672_s30 + $0xb0] sm:$0xff] %v1595_v44  ;;  %v1565_v47 = vadd.f32 %v2220_v45, %v2666_v63  ;;  %v2116_v48 = vpop.f32.mrb[26].mxu1  ;;  %v2168_v49 = vpop.f32.mrb[26].mxu0 }
 0x145   : > { %v1598_v50 = vmax.f32 %v1566_v46, 0.0  ;;  %v2221_v51 = vadd.f32 %v2168_v49, %v2116_v48  ;;  %v953_v52 = vpop.f32.mrb[27].mxu1  ;;  %v1409_v53 = vpop.f32.mrb[27].mxu0 }
 0x146   : > { %v1597_v54 = vmax.f32 %v1565_v47, 0.0  ;;  %v2222_v55 = vadd.f32 %v1409_v53, %v953_v52 }
 0x147   : > { %1630 = vst [vmem:[%s2672_s30 + $0xc8] sm:$0xff] %v1598_v50  ;;  %v1568_v56 = vadd.f32 %v2221_v51, %v2666_v63 }
 0x148   : > { %1629 = vst [vmem:[%s2672_s30 + $0xc0] sm:$0xff] %v1597_v54  ;;  %v1567_v57 = vadd.f32 %v2222_v55, %v2666_v63  ;;  %v2119_v58 = vpop.f32.mrb[28].mxu1  ;;  %v2171_v62 = vpop.f32.mrb[28].mxu0 }
 0x149   : > { %v1600_v59 = vmax.f32 %v1568_v56, 0.0  ;;  %v2223_v0 = vadd.f32 %v2171_v62, %v2119_v58  ;;  %v963_v1 = vpop.f32.mrb[29].mxu1  ;;  %v1419_v2 = vpop.f32.mrb[29].mxu0 }
 0x14a   : > { %v1599_v3 = vmax.f32 %v1567_v57, 0.0  ;;  %v2224_v4 = vadd.f32 %v1419_v2, %v963_v1 }
 0x14b   : > { %1632 = vst [vmem:[%s2672_s30 + $0xd8] sm:$0xff] %v1600_v59  ;;  %v1570_v5 = vadd.f32 %v2223_v0, %v2666_v63 }
 0x14c   : > { %1631 = vst [vmem:[%s2672_s30 + $0xd0] sm:$0xff] %v1599_v3  ;;  %v1569_v60 = vadd.f32 %v2224_v4, %v2666_v63  ;;  %v2122_v6 = vpop.f32.mrb[30].mxu1  ;;  %v2174_v7 = vpop.f32.mrb[30].mxu0 }
 0x14d   : > { %v1602_v61 = vmax.f32 %v1570_v5, 0.0  ;;  %v2225_v8 = vadd.f32 %v2174_v7, %v2122_v6  ;;  %v973_v9 = vpop.f32.mrb[31].mxu1  ;;  %v1429_v10 = vpop.f32.mrb[31].mxu0 }
 0x14e   : > { %v1601_v11 = vmax.f32 %v1569_v60, 0.0  ;;  %v2226_v12 = vadd.f32 %v1429_v10, %v973_v9 }
 0x14f   : > { %1634 = vst [vmem:[%s2672_s30 + $0xe8] sm:$0xff] %v1602_v61  ;;  %v1572_v13 = vadd.f32 %v2225_v8, %v2666_v63 }
 0x150   : > { %1633 = vst [vmem:[%s2672_s30 + $0xe0] sm:$0xff] %v1601_v11  ;;  %v1571_v14 = vadd.f32 %v2226_v12, %v2666_v63 }
 0x151   : > { %v1604_v15 = vmax.f32 %v1572_v13, 0.0 }
 0x152   : > { %v1603_v16 = vmax.f32 %v1571_v14, 0.0 }
 0x153   : > { %1636 = vst [vmem:[%s2672_s30 + $0xf8] sm:$0xff] %v1604_v15 }
 0x154   : > { %1635 = vst [vmem:[%s2672_s30 + $0xf0] sm:$0xff] %v1603_v16 }
 0x155   : > { %2331 = shalt.err (!%p2328_p5)
}
 0x156   : > { %s2332_s19 = scalar_lea.hbm %s2743_s8, 4096  ;;  %s2336_s26 = scalar_lea.hbm %s2800_s3, 8192 }
 0x157   : > { %p2333_p6 = scmp.ne.s32.totalorder %s2743_s8, %s2332_s19  ;;  %p2337_p10 = scmp.lt.u32.totalorder %s2743_s8, %s2800_s3 }
 0x158   : > { %p2338_p11 = scmp.lt.u32.totalorder %s2336_s26, %s2332_s19  ;;  %p2340_p13 = scmp.lt.u32.totalorder %s2332_s19, %s2743_s8 }
 0x159   : > { %p2334_p7 = pnand %p2333_p6, %p2462_p4 }
 0x15a   : > { %p2339_p12 = por %p2338_p11, %p2337_p10 }
 0x15b   : > { %p2335_p9 = pneg %p2334_p7 }
 0x15c   : > { %p2341_p0 = por %p2340_p13, %p2339_p12 }
 0x15e   : > { %p2342_p1 = pnand %p2341_p0, %p2335_p9 }
 0x160   : > { %2345 = shalt.err (!%p2342_p1)
}
 0x161   : > { %s2400_s29 = smov 128   ;;  %s2401_s30 = smov 8  }
 0x162   : > { %2260 = dma.vmem_to_hbm [thread:$0]  (%p2462_p4), %s2745_s5, 4096, %s2743_s8, %s2751_s15, %s2400_s29, %s2400_s29, %s2401_s30  }
 0x163 PF: > { %p2266_p2 = scmp.ge.s32.totalorder %s2396_s17, 2  ;;  %s1669_s4 = sand.u32 1, %s2376_s12  }
 0x164   : > { %s1670_s6 = scalar_lea.sflag [#allocation4], %s1669_s4 }
 0x165   : > { %p2263_p3 = pnand %p2266_p2, %p2469_p8 }
 0x167   : > { %2371 = dma.done.wait (!%p2263_p3), %s1670_s6, 4096  }
 0x168   : > { %2373 = vsyncadd (!%p2263_p3), %s1670_s6, 4294963200  ;;  %s16_s17 = sadd.s32 1, %s2396_s17   ;;  %s2805_s12 = smov %s2380_s13 }
 0x169   : > { %p13_p5 = scmp.ge.s32.totalorder %s16_s17, 4   ;;  %s2806_s13 = smov %s2384_s14 }
 0x16a   : > { %s2807_s14 = smov %s2475_s25  ;;  %s2808_s15 = smov %s2392_s16 }
 0x16b   : > { %s2809_s16 = smov %s2811_s20  ;;  %15 = sbr.rel (!%p13_p5) target bundleno = 4 (0x4), region = 71 }
 0x172   :  { %1675 = vsyncpa [#allocation4], 1 }
 0x173   :  { %1677 = vsyncpa [#allocation4 + $0x1], 1 }

</bundles_post_ra>
